<compile_context>
chip_gen: v7x
topology: tpu7x:2x2x1
jax: 0.10.0
libtpu: 0.0.40
codegen_flags: <defaults>
</compile_context>

<pallas_src>
import functools

import jax
import jax.numpy as jnp
from jax.experimental import pallas as pl
from jax.experimental.pallas import tpu as pltpu


def _semantic_change_kernel(ids_ref, b_ref, avg_ref, w_hbm, emb_hbm,
                            out_ref,
                            w_vmem, x_vmem, acc_ref, sem,
                            *, tm, tiles_per_core, bs_true):
    # ids_ref:  (bs_pad,)       int32  SMEM  (scalar-prefetched, mask already folded in)
    # b_ref:    (1, H)          f32    VMEM  encoder bias (resident)
    # avg_ref:  (1, H)          f32    VMEM  average_embedding (resident)
    # w_hbm:    (Hin, H)        bf16   HBM   encoder weight (staged once into w_vmem)
    # emb_hbm:  (vocab+1, Hin)  f32    HBM   embedding table (+ zero row for mask/pad)
    # out_ref:  (1, 1, 1)       f32          per-core partial sum of distances
    # w_vmem:   (Hin, H)        bf16   VMEM scratch
    # x_vmem:   (tm, Hin)       f32    VMEM scratch (gathered rows)
    # acc_ref:  (tm, 1)         f32    VMEM scratch (vector accumulator)
    # sem:      (1,)            DMA semaphore
    c = pl.program_id(0)
    i = pl.program_id(1)

    # Once per core: zero the vector accumulator and stage W into VMEM (single copy,
    # single residency -- no double-buffering of the resident table).
    @pl.when(i == 0)
    def _init():
        acc_ref[...] = jnp.zeros_like(acc_ref)
        cp = pltpu.make_async_copy(w_hbm, w_vmem, sem.at[0])
        cp.start()
        cp.wait()

    base = (c * tiles_per_core + i) * tm  # first flat token row of this tile

    # Real gather: one small DMA per token row, ids read on the scalar path (SMEM).
    @pl.loop(0, tm)
    def _issue(r):
        tok = ids_ref[base + r]
        pltpu.make_async_copy(emb_hbm.at[pl.ds(tok, 1), :],
                              x_vmem.at[pl.ds(r, 1), :],
                              sem.at[0]).start()

    @pl.loop(0, tm)
    def _drain(r):
        # Same-shaped descriptor; one wait per issued row copy.
        pltpu.make_async_copy(emb_hbm.at[pl.ds(0, 1), :],
                              x_vmem.at[pl.ds(0, 1), :],
                              sem.at[0]).wait()

    # Synthetic encoder: bf16 MXU inputs, f32 accumulation, f32 elementwise epilogue.
    hidden = jnp.tanh(
        jnp.dot(x_vmem[...].astype(jnp.bfloat16), w_vmem[...],
                preferred_element_type=jnp.float32) + b_ref[...])       # (tm, H) f32

    diff = hidden - avg_ref[...]
    dist = jnp.sqrt(jnp.sum(diff * diff, axis=-1, keepdims=True))       # (tm, 1) f32

    # Vector accumulation; only a tile that actually contains padded rows pays for
    # the iota/compare/mask.
    has_pad = base + tm > bs_true

    @pl.when(jnp.logical_not(has_pad))
    def _acc_full():
        acc_ref[...] += dist

    @pl.when(has_pad)
    def _acc_masked():
        rows = base + jax.lax.broadcasted_iota(jnp.int32, (tm, 1), 0)
        acc_ref[...] += dist * (rows < bs_true).astype(jnp.float32)

    @pl.when(i == pl.num_programs(1) - 1)
    def _finalize():
        # Single cross-sublane reduce per core, written once.
        out_ref[0] = jnp.sum(acc_ref[...], axis=0, keepdims=True)


def semantic_change_score(input_ids, attention_mask, embed_table, w, b,
                          average_embedding, *, tm=256, n_cores=1):
    """Returns a shape-(1,) f32 score, matching SemanticChangeModel.forward."""
    B, S = input_ids.shape
    bs = B * S
    vocab, h_in = embed_table.shape
    h = w.shape[1]

    tiles_per_core = pl.cdiv(bs, n_cores * tm)
    bs_pad = n_cores * tiles_per_core * tm
    zero_tok = vocab  # index of the appended all-zero embedding row

    # Fold the attention mask into the ids (masked tokens -> zero row), pad to grid.
    ids = input_ids.reshape(-1).astype(jnp.int32)
    mask = attention_mask.reshape(-1)
    ids = jnp.where(mask != 0, ids, zero_tok)
    ids = jnp.pad(ids, (0, bs_pad - bs), constant_values=zero_tok)

    emb_ext = jnp.concatenate(
        [embed_table.astype(jnp.float32), jnp.zeros((1, h_in), jnp.float32)], axis=0)
    w_bf = w.astype(jnp.bfloat16)
    b2 = b.reshape(1, h).astype(jnp.float32)
    avg2 = average_embedding.reshape(1, h).astype(jnp.float32)

    kernel = functools.partial(_semantic_change_kernel, tm=tm,
                               tiles_per_core=tiles_per_core, bs_true=bs)

    cost = pl.CostEstimate(
        flops=2 * bs_pad * h_in * h + 6 * bs_pad * h,
        transcendentals=bs_pad * h + bs_pad,
        bytes_accessed=4 * bs_pad + 4 * bs_pad * h_in + 2 * h_in * h + 8 * h
                       + 4 * n_cores)

    partial_sums = pl.pallas_call(
        kernel,
        out_shape=jax.ShapeDtypeStruct((n_cores, 1, 1), jnp.float32),
        grid_spec=pltpu.PrefetchScalarGridSpec(
            num_scalar_prefetch=1,                      # ids -> SMEM, scalar path
            grid=(n_cores, tiles_per_core),
            in_specs=[
                pl.BlockSpec((1, h), lambda c, i, ids: (0, 0)),   # b (resident)
                pl.BlockSpec((1, h), lambda c, i, ids: (0, 0)),   # avg (resident)
                pl.BlockSpec(memory_space=pl.ANY),                # W in HBM
                pl.BlockSpec(memory_space=pl.ANY),                # embedding table in HBM
            ],
            out_specs=pl.BlockSpec((1, 1, 1), lambda c, i, ids: (c, 0, 0)),
            scratch_shapes=[
                pltpu.VMEM((h_in, h), jnp.bfloat16),   # W staged once per core
                pltpu.VMEM((tm, h_in), jnp.float32),   # gathered embedding rows
                pltpu.VMEM((tm, 1), jnp.float32),      # vector accumulator
                pltpu.SemaphoreType.DMA((1,)),
            ]),
        compiler_params=pltpu.CompilerParams(
            dimension_semantics=("parallel", "arbitrary"),
            vmem_limit_bytes=32 * 1024 * 1024),
        cost_estimate=cost,
    )(ids, b2, avg2, w_bf, emb_ext)

    # Combine per-core partial sums; divide by the TRUE token count (not padded).
    return (jnp.sum(partial_sums) / bs).reshape(1).astype(jnp.float32)


def _reference(input_ids, attention_mask, embed_table, w, b, average_embedding):
    # Mirrors the kernel numerics (f32 gather, bf16 MXU matmul, f32 epilogue).
    ids = input_ids.reshape(-1)
    mask = (attention_mask.reshape(-1) != 0)
    x = jnp.take(embed_table.astype(jnp.float32), ids, axis=0)
    x = jnp.where(mask[:, None], x, 0.0)
    hidden = jnp.tanh(
        jnp.dot(x.astype(jnp.bfloat16), w.astype(jnp.bfloat16),
                preferred_element_type=jnp.float32) + b.reshape(1, -1))
    dist = jnp.sqrt(jnp.sum((hidden - average_embedding.reshape(1, -1)) ** 2, axis=-1))
    return jnp.mean(dist).reshape(1)


if __name__ == "__main__":
    B, S = 2, 120          # B*S = 240 -> padded to 256 (exercises padded-row masking)
    VOCAB = 128
    H_IN, H = 128, 128     # lane-dense hidden dims

    key = jax.random.PRNGKey(0)
    k_ids, k_emb, k_w, k_b, k_avg = jax.random.split(key, 5)

    input_ids = jax.random.randint(k_ids, (B, S), 0, VOCAB, dtype=jnp.int32)
    attention_mask = jnp.ones((B, S), dtype=jnp.int32).at[:, S - 8:].set(0)

    embed_table = jax.random.normal(k_emb, (VOCAB, H_IN), dtype=jnp.float32) * 0.1
    w = jax.random.normal(k_w, (H_IN, H), dtype=jnp.float32) * 0.1
    b = jax.random.normal(k_b, (H,), dtype=jnp.float32) * 0.01
    average_embedding = jax.random.normal(k_avg, (H,), dtype=jnp.float32) * 0.1

    score = semantic_change_score(input_ids, attention_mask, embed_table, w, b,
                                  average_embedding, tm=128, n_cores=1)
    score = jax.block_until_ready(score)

    ref = _reference(input_ids, attention_mask, embed_table, w, b, average_embedding)
    assert score.shape == (1,)
    assert jnp.allclose(score, ref, atol=1e-3, rtol=1e-3), (score, ref)
    print("KERNEL_OK")
</pallas_src>

<mosaic_0001>
module attributes {stable_mosaic.version = 11 : i64} {
  func.func @_semantic_change_kernel(%arg0: i32, %arg1: i32, %arg2: memref<256xi32, #tpu.memory_space<smem>>, %arg3: memref<1x128xf32, #tpu.memory_space<vmem>>, %arg4: memref<1x128xf32, #tpu.memory_space<vmem>>, %arg5: memref<128x128xbf16, #tpu.memory_space<any>>, %arg6: memref<129x128xf32, #tpu.memory_space<any>>, %arg7: memref<1x1x1xf32, #tpu.memory_space<vmem>>, %arg8: memref<128x128xbf16, #tpu.memory_space<vmem>>, %arg9: memref<128x128xf32, #tpu.memory_space<vmem>>, %arg10: memref<128x1xf32, #tpu.memory_space<vmem>>, %arg11: memref<1x!tpu.dma_semaphore, #tpu.memory_space<semaphore_mem>>) attributes {dimension_semantics = [#tpu.dimension_semantics<parallel>, #tpu.dimension_semantics<arbitrary>], iteration_bounds = array<i64: 1, 2>, scalar_prefetch = 1 : i64, scratch_operands = 4 : i64, tpu.core_type = #tpu.core_type<tc>, window_params = [{pipeline_mode = #tpu.pipeline_mode<synchronous>, transform_indices = @transform_0, window_bounds = array<i64: 1, 128>}, {pipeline_mode = #tpu.pipeline_mode<synchronous>, transform_indices = @transform_1, window_bounds = array<i64: 1, 128>}, {}, {}, {transform_indices = @transform_4, window_bounds = array<i64: 1, 1, 1>}]} {
    %c0_i32 = arith.constant 0 : i32
    %0 = arith.cmpi eq, %arg1, %c0_i32 : i32
    %1 = arith.extui %0 : i1 to i32
    %c0_i32_0 = arith.constant 0 : i32
    %2 = arith.cmpi ne, %1, %c0_i32_0 : i32
    scf.if %2 {
      %cst_20 = arith.constant 0.000000e+00 : f32
      %33 = vector.broadcast %cst_20 : f32 to vector<128x1xf32>
      %c0_21 = arith.constant 0 : index
      %c0_22 = arith.constant 0 : index
      %34 = vector.load %arg10[%c0_21, %c0_22] : memref<128x1xf32, #tpu.memory_space<vmem>>, vector<128x1xf32>
      tpu.vector_store %arg10[%c0_21, %c0_22], %33 {strides = array<i32>} : memref<128x1xf32, #tpu.memory_space<vmem>>, vector<128x1xf32>,
      %c0_i32_23 = arith.constant 0 : i32
      %35 = tpu.memref_slice %arg11[%c0_i32_23] : memref<1x!tpu.dma_semaphore, #tpu.memory_space<semaphore_mem>> -> memref<1x!tpu.dma_semaphore, #tpu.memory_space<semaphore_mem>>
      %36 = tpu.memref_squeeze %35 : memref<1x!tpu.dma_semaphore, #tpu.memory_space<semaphore_mem>> -> memref<!tpu.dma_semaphore, #tpu.memory_space<semaphore_mem>>
      tpu.enqueue_dma source(%arg5 : memref<128x128xbf16, #tpu.memory_space<any>>) target(%arg8 : memref<128x128xbf16, #tpu.memory_space<vmem>>) target_semaphore(%36 : memref<!tpu.dma_semaphore, #tpu.memory_space<semaphore_mem>>)
      %c0_i32_24 = arith.constant 0 : i32
      %37 = tpu.memref_slice %arg11[%c0_i32_24] : memref<1x!tpu.dma_semaphore, #tpu.memory_space<semaphore_mem>> -> memref<1x!tpu.dma_semaphore, #tpu.memory_space<semaphore_mem>>
      %38 = tpu.memref_squeeze %37 : memref<1x!tpu.dma_semaphore, #tpu.memory_space<semaphore_mem>> -> memref<!tpu.dma_semaphore, #tpu.memory_space<semaphore_mem>>
      tpu.wait_dma2 semaphore(%38 : memref<!tpu.dma_semaphore, #tpu.memory_space<semaphore_mem>>) src(%arg5 : memref<128x128xbf16, #tpu.memory_space<any>>) dst(%arg8 : memref<128x128xbf16, #tpu.memory_space<vmem>>)
    } else {
    }
    %c2_i32 = arith.constant 2 : i32
    %3 = arith.muli %arg0, %c2_i32 : i32
    %4 = arith.addi %3, %arg1 : i32
    %c128_i32 = arith.constant 128 : i32
    %5 = arith.muli %4, %c128_i32 : i32
    %c0_i32_1 = arith.constant 0 : i32
    %c128_i32_2 = arith.constant 128 : i32
    %6 = arith.addi %c0_i32_1, %c128_i32_2 : i32
    %c1_i32 = arith.constant 1 : i32
    scf.for %arg12 = %c0_i32_1 to %6 step %c1_i32  : i32 {
      %c1_i32_20 = arith.constant 1 : i32
      %33 = arith.muli %arg12, %c1_i32_20 : i32
      %c0_i32_21 = arith.constant 0 : i32
      %34 = arith.addi %c0_i32_21, %33 : i32
      %35 = arith.addi %5, %34 : i32
      %36 = arith.index_cast %35 : i32 to index
      %37 = memref.load %arg2[%36] : memref<256xi32, #tpu.memory_space<smem>>
      %c0_i32_22 = arith.constant 0 : i32
      %c0_i32_23 = arith.constant 0 : i32
      %38 = tpu.memref_slice %arg6[%37, %c0_i32_23] : memref<129x128xf32, #tpu.memory_space<any>> -> memref<1x128xf32, #tpu.memory_space<any>>
      %c0_i32_24 = arith.constant 0 : i32
      %39 = tpu.memref_slice %arg9[%34, %c0_i32_24] : memref<128x128xf32, #tpu.memory_space<vmem>> -> memref<1x128xf32, #tpu.memory_space<vmem>>
      %40 = tpu.memref_slice %arg11[%c0_i32_22] : memref<1x!tpu.dma_semaphore, #tpu.memory_space<semaphore_mem>> -> memref<1x!tpu.dma_semaphore, #tpu.memory_space<semaphore_mem>>
      %41 = tpu.memref_squeeze %40 : memref<1x!tpu.dma_semaphore, #tpu.memory_space<semaphore_mem>> -> memref<!tpu.dma_semaphore, #tpu.memory_space<semaphore_mem>>
      tpu.enqueue_dma source(%38 : memref<1x128xf32, #tpu.memory_space<any>>) target(%39 : memref<1x128xf32, #tpu.memory_space<vmem>>) target_semaphore(%41 : memref<!tpu.dma_semaphore, #tpu.memory_space<semaphore_mem>>)
    }
    %c128_i32_3 = arith.constant 128 : i32
    %c0_i32_4 = arith.constant 0 : i32
    %c128_i32_5 = arith.constant 128 : i32
    %7 = arith.addi %c0_i32_4, %c128_i32_5 : i32
    %c1_i32_6 = arith.constant 1 : i32
    scf.for %arg12 = %c0_i32_4 to %7 step %c1_i32_6  : i32 {
      %c0_i32_20 = arith.constant 0 : i32
      %c0_i32_21 = arith.constant 0 : i32
      %c0_i32_22 = arith.constant 0 : i32
      %33 = tpu.memref_slice %arg6[%c0_i32_21, %c0_i32_22] : memref<129x128xf32, #tpu.memory_space<any>> -> memref<1x128xf32, #tpu.memory_space<any>>
      %c0_i32_23 = arith.constant 0 : i32
      %c0_i32_24 = arith.constant 0 : i32
      %34 = tpu.memref_slice %arg9[%c0_i32_23, %c0_i32_24] : memref<128x128xf32, #tpu.memory_space<vmem>> -> memref<1x128xf32, #tpu.memory_space<vmem>>
      %35 = tpu.memref_slice %arg11[%c0_i32_20] : memref<1x!tpu.dma_semaphore, #tpu.memory_space<semaphore_mem>> -> memref<1x!tpu.dma_semaphore, #tpu.memory_space<semaphore_mem>>
      %36 = tpu.memref_squeeze %35 : memref<1x!tpu.dma_semaphore, #tpu.memory_space<semaphore_mem>> -> memref<!tpu.dma_semaphore, #tpu.memory_space<semaphore_mem>>
      tpu.wait_dma2 semaphore(%36 : memref<!tpu.dma_semaphore, #tpu.memory_space<semaphore_mem>>) src(%33 : memref<1x128xf32, #tpu.memory_space<any>>) dst(%34 : memref<1x128xf32, #tpu.memory_space<vmem>>)
    }
    %c0 = arith.constant 0 : index
    %c0_7 = arith.constant 0 : index
    %8 = vector.load %arg9[%c0, %c0_7] : memref<128x128xf32, #tpu.memory_space<vmem>>, vector<128x128xf32>
    %9 = arith.truncf %8 : vector<128x128xf32> to vector<128x128xbf16>
    %c0_8 = arith.constant 0 : index
    %c0_9 = arith.constant 0 : index
    %10 = vector.load %arg8[%c0_8, %c0_9] : memref<128x128xbf16, #tpu.memory_space<vmem>>, vector<128x128xbf16>
    %cst = arith.constant dense<0.000000e+00> : vector<128x128xf32>
    %11 = tpu.matmul %9, %10, %cst {dimension_numbers = #tpu.dot_dimension_numbers<[1], [0], [0], [1], [0, 0, 1, 1], [], []>} : vector<128x128xbf16>, vector<128x128xbf16>, vector<128x128xf32> -> vector<128x128xf32>
    %c0_10 = arith.constant 0 : index
    %c0_11 = arith.constant 0 : index
    %12 = vector.load %arg3[%c0_10, %c0_11] : memref<1x128xf32, #tpu.memory_space<vmem>>, vector<1x128xf32>
    %13 = vector.broadcast %12 : vector<1x128xf32> to vector<128x128xf32>
    %14 = arith.addf %11, %13 : vector<128x128xf32>
    %15 = math.tanh %14 : vector<128x128xf32>
    %c0_12 = arith.constant 0 : index
    %c0_13 = arith.constant 0 : index
    %16 = vector.load %arg4[%c0_12, %c0_13] : memref<1x128xf32, #tpu.memory_space<vmem>>, vector<1x128xf32>
    %17 = vector.broadcast %16 : vector<1x128xf32> to vector<128x128xf32>
    %18 = arith.subf %15, %17 : vector<128x128xf32>
    %19 = arith.mulf %18, %18 : vector<128x128xf32>
    %cst_14 = arith.constant dense<0.000000e+00> : vector<128xf32>
    %20 = vector.multi_reduction <add>, %19, %cst_14 [1] : vector<128x128xf32> to vector<128xf32>
    %21 = vector.shape_cast %20 : vector<128xf32> to vector<128x1xf32>
    %22 = math.sqrt %21 : vector<128x1xf32>
    %c128_i32_15 = arith.constant 128 : i32
    %23 = arith.addi %5, %c128_i32_15 : i32
    %c240_i32 = arith.constant 240 : i32
    %24 = arith.cmpi sgt, %23, %c240_i32 : i32
    %true = arith.constant true
    %25 = arith.xori %24, %true : i1
    %26 = arith.extui %25 : i1 to i32
    %c0_i32_16 = arith.constant 0 : i32
    %27 = arith.cmpi ne, %26, %c0_i32_16 : i32
    scf.if %27 {
      %c0_20 = arith.constant 0 : index
      %c0_21 = arith.constant 0 : index
      %33 = vector.load %arg10[%c0_20, %c0_21] : memref<128x1xf32, #tpu.memory_space<vmem>>, vector<128x1xf32>
      %34 = arith.addf %33, %22 : vector<128x1xf32>
      %c0_22 = arith.constant 0 : index
      %c0_23 = arith.constant 0 : index
      %35 = vector.load %arg10[%c0_22, %c0_23] : memref<128x1xf32, #tpu.memory_space<vmem>>, vector<128x1xf32>
      tpu.vector_store %arg10[%c0_22, %c0_23], %34 {strides = array<i32>} : memref<128x1xf32, #tpu.memory_space<vmem>>, vector<128x1xf32>,
    } else {
    }
    %28 = arith.extui %24 : i1 to i32
    %c0_i32_17 = arith.constant 0 : i32
    %29 = arith.cmpi ne, %28, %c0_i32_17 : i32
    scf.if %29 {
      %33 = tpu.iota {dimensions = array<i32: 0>} : vector<128x1xi32>
      %34 = vector.broadcast %5 : i32 to vector<128x1xi32>
      %35 = arith.addi %34, %33 : vector<128x1xi32>
      %c0_20 = arith.constant 0 : index
      %c0_21 = arith.constant 0 : index
      %36 = vector.load %arg10[%c0_20, %c0_21] : memref<128x1xf32, #tpu.memory_space<vmem>>, vector<128x1xf32>
      %c240_i32_22 = arith.constant 240 : i32
      %37 = vector.broadcast %c240_i32_22 : i32 to vector<128x1xi32>
      %38 = arith.cmpi slt, %35, %37 : vector<128x1xi32>
      %39 = arith.extui %38 : vector<128x1xi1> to vector<128x1xi32>
      %40 = arith.sitofp %39 : vector<128x1xi32> to vector<128x1xf32>
      %41 = arith.mulf %22, %40 : vector<128x1xf32>
      %42 = arith.addf %36, %41 : vector<128x1xf32>
      %c0_23 = arith.constant 0 : index
      %c0_24 = arith.constant 0 : index
      %43 = vector.load %arg10[%c0_23, %c0_24] : memref<128x1xf32, #tpu.memory_space<vmem>>, vector<128x1xf32>
      tpu.vector_store %arg10[%c0_23, %c0_24], %42 {strides = array<i32>} : memref<128x1xf32, #tpu.memory_space<vmem>>, vector<128x1xf32>,
    } else {
    }
    %c1_i32_18 = arith.constant 1 : i32
    %30 = arith.cmpi eq, %arg1, %c1_i32_18 : i32
    %31 = arith.extui %30 : i1 to i32
    %c0_i32_19 = arith.constant 0 : i32
    %32 = arith.cmpi ne, %31, %c0_i32_19 : i32
    scf.if %32 {
      %c0_20 = arith.constant 0 : index
      %c0_21 = arith.constant 0 : index
      %33 = vector.load %arg10[%c0_20, %c0_21] : memref<128x1xf32, #tpu.memory_space<vmem>>, vector<128x1xf32>
      %cst_22 = arith.constant dense<0.000000e+00> : vector<1xf32>
      %34 = vector.multi_reduction <add>, %33, %cst_22 [0] : vector<128x1xf32> to vector<1xf32>
      %35 = vector.shape_cast %34 : vector<1xf32> to vector<1x1xf32>
      %c0_23 = arith.constant 0 : index
      %c0_24 = arith.constant 0 : index
      %c0_25 = arith.constant 0 : index
      %36 = vector.load %arg7[%c0_23, %c0_24, %c0_25] : memref<1x1x1xf32, #tpu.memory_space<vmem>>, vector<1x1x1xf32>
      %37 = vector.shape_cast %36 : vector<1x1x1xf32> to vector<1x1xf32>
      %38 = vector.shape_cast %35 : vector<1x1xf32> to vector<1x1x1xf32>
      tpu.vector_store %arg7[%c0_23, %c0_24, %c0_25], %38 {strides = array<i32>} : memref<1x1x1xf32, #tpu.memory_space<vmem>>, vector<1x1x1xf32>,
    } else {
    }
    return
  }
  func.func @transform_0(%arg0: i32, %arg1: i32, %arg2: memref<256xi32, #tpu.memory_space<smem>>) -> (i32, i32) {
    %c0_i32 = arith.constant 0 : i32
    %c0_i32_0 = arith.constant 0 : i32
    %c0_i32_1 = arith.constant 0 : i32
    return %c0_i32, %c0_i32_0 : i32, i32
  }
  func.func @transform_1(%arg0: i32, %arg1: i32, %arg2: memref<256xi32, #tpu.memory_space<smem>>) -> (i32, i32) {
    %c0_i32 = arith.constant 0 : i32
    %c0_i32_0 = arith.constant 0 : i32
    %c0_i32_1 = arith.constant 0 : i32
    return %c0_i32, %c0_i32_0 : i32, i32
  }
  func.func @transform_4(%arg0: i32, %arg1: i32, %arg2: memref<256xi32, #tpu.memory_space<smem>>) -> (i32, i32, i32) {
    %c0_i32 = arith.constant 0 : i32
    %c0_i32_0 = arith.constant 0 : i32
    %c0_i32_1 = arith.constant 0 : i32
    return %arg0, %c0_i32, %c0_i32_0 : i32, i32, i32
  }
}

</mosaic_0001>

<bundles_post_ra>
// kernel: tpu_custom_call.1
= control target key start
LH: loop header
LB: loop body
LE: loop exit
PB: predicated region body
PF: predicated region fallthrough
CT: control target
= control target key end

     0   :  { %s1625_s0 = inlined_call_operand.hbm [shape: s32[256], index: 0, kind: input, shape index: {}]   ;;  %s1626_s1 = inlined_call_operand.vmem [shape: f32[1,128], index: 1, kind: input, shape index: {}]   ;;  %s1627_s2 = inlined_call_operand.vmem [shape: f32[1,128], index: 2, kind: input, shape index: {}]   ;;  %s1628_s3 = inlined_call_operand.hbm [shape: bf16[128,128], index: 3, kind: input, shape index: {}]   ;;  %s1629_s4 = inlined_call_operand.hbm [shape: f32[129,128], index: 4, kind: input, shape index: {}]   ;;  %s1630_s5 = inlined_call_operand.hbm [shape: f32[1,1,1], index: 5, kind: output, shape index: {}]  }
   0x1   :  { %s1082_s20 = scalar_lea.hbm %s1625_s0, 32 }
   0x2   :  { %p1083_p0 = scmp.ne.s32.totalorder %s1625_s0, %s1082_s20  ;;  %p1086_p1 = scmp.lt.u32.totalorder %s1082_s20, %s1625_s0 }
   0x4   :  { %p1088_p2 = pnand %p1086_p1, %p1083_p0 }
   0x6   :  { %1091 = shalt.err (!%p1088_p2)  }
   0x7   :  { %s1214_s25 = smov [#allocation7]  }
   0x8   :  { %11 = dma.hbm_to_smem %s1625_s0, 32, %s1214_s25, [#allocation6] }
   0x9   :  { %1184 = dma.done.wait [#allocation6], 32 }
   0xa   :  { %1185 = vsyncadd [#allocation6], 4294967264 }
   0xb   :  { %13 = sfence }
   0xc   :  { %14 = vsyncpa [#allocation9], 0  ;;  %s1262_s28 = smov 0   ;;  %s1264_s29 = smov 0  }
   0xd   :  { %s1266_s30 = smov 0  }
   0xe LB: > { %s871_s0 = sadd.s32 4294967295, %s1204_s30   ;;  %s29_s6 = sadd.s32 1, %s1200_s29  ;;  %s1204_s30 = sphi %s1266_s30, %s20_s30   ;;  %s1200_s29 = sphi %s1264_s29, %s1633_s29   ;;  %s1196_s28 = sphi %s1262_s28, %s1632_s28  }
   0xf   : > { %p30_p3 = scmp.ge.s32.totalorder %s29_s6, 2  ;;  %p873_p4 = scmp.ge.s32.totalorder %s1204_s30, 1 }
  0x10   : > { %p122_p5 = scmp.lt.s32.totalorder %s1204_s30, 3 }
  0x11   : > { %s1635_s6 = smov (%p30_p3, %s29_s6), 0 }
  0x12   : > { %p123_p6 = pnand %p873_p4, %p122_p5 }
  0x13   : > { %p874_p7 = scmp.ne.s32.totalorder (!%p123_p6), %s1196_s28, 0 }
  0x14   : > { %126 = sbr.rel (%p123_p6) target bundleno = 649 (0x289), region = 28 }
  0x1b   : > { %138 = sbr.rel (%p874_p7) target bundleno = 48 (0x30), region = 32  ;;  %vm139_vm0 = vcmask (!%p874_p7), 7168   ;;  %v1215_v0 = vmov (!%p874_p7), 0.0   ;;  %s1216_s7 = smov (!%p874_p7), [#allocation2]  }
  0x1c   : > { %140 = vst.msk [vmem:[#allocation4] sm:$0xff] (!%p874_p7), %vm139_vm0, %v1215_v0  ;;  %141 = vst.msk [vmem:[#allocation4 + $0x8] sm:$0xff] (!%p874_p7), %vm139_vm0, %v1215_v0  ;;  %s163_s8 = sshll.u32 (!%p874_p7), %s1216_s7, 4  ;;  %s1092_s11 = scalar_lea.hbm (!%p874_p7), %s1628_s3, 1024  ;;  %s164_s8 = int_to_ptr.vmem [resolvable:$true] %s163_s8 }
  0x1d   : > { %142 = vst.msk [vmem:[#allocation4 + $0x10] sm:$0xff] (!%p874_p7), %vm139_vm0, %v1215_v0  ;;  %143 = vst.msk [vmem:[#allocation4 + $0x18] sm:$0xff] (!%p874_p7), %vm139_vm0, %v1215_v0  ;;  %p1093_p8 = scmp.ne.s32.totalorder (!%p874_p7), %s1628_s3, %s1092_s11  ;;  %p1096_p9 = scmp.lt.u32.totalorder (!%p874_p7), %s1092_s11, %s1628_s3 }
  0x1e   : > { %144 = vst.msk [vmem:[#allocation4 + $0x20] sm:$0xff] (!%p874_p7), %vm139_vm0, %v1215_v0  ;;  %145 = vst.msk [vmem:[#allocation4 + $0x28] sm:$0xff] (!%p874_p7), %vm139_vm0, %v1215_v0 }
  0x1f   : > { %146 = vst.msk [vmem:[#allocation4 + $0x30] sm:$0xff] (!%p874_p7), %vm139_vm0, %v1215_v0  ;;  %147 = vst.msk [vmem:[#allocation4 + $0x38] sm:$0xff] (!%p874_p7), %vm139_vm0, %v1215_v0  ;;  %p1098_p10 = pnand (!%p874_p7), %p1096_p9, %p1093_p8 }
  0x20   : > { %148 = vst.msk [vmem:[#allocation4 + $0x40] sm:$0xff] (!%p874_p7), %vm139_vm0, %v1215_v0  ;;  %149 = vst.msk [vmem:[#allocation4 + $0x48] sm:$0xff] (!%p874_p7), %vm139_vm0, %v1215_v0 }
  0x21   : > { %150 = vst.msk [vmem:[#allocation4 + $0x50] sm:$0xff] (!%p874_p7), %vm139_vm0, %v1215_v0  ;;  %151 = vst.msk [vmem:[#allocation4 + $0x58] sm:$0xff] (!%p874_p7), %vm139_vm0, %v1215_v0 }
  0x22   : > { %152 = vst.msk [vmem:[#allocation4 + $0x60] sm:$0xff] %vm139_vm0, %v1215_v0  ;;  %153 = vst.msk [vmem:[#allocation4 + $0x68] sm:$0xff] %vm139_vm0, %v1215_v0 }
  0x23   : > { %154 = vst.msk [vmem:[#allocation4 + $0x70] sm:$0xff] %vm139_vm0, %v1215_v0  ;;  %155 = vst.msk [vmem:[#allocation4 + $0x78] sm:$0xff] %vm139_vm0, %v1215_v0 }
  0x24   : > { %1101 = shalt.err (!%p1098_p10)  }
  0x25   : > { %s1102_s16 = scalar_lea.vmem %s164_s8, 1024  ;;  %p1107_p12 = scmp.lt.s32.totalorder %s164_s8, %s164_s8 }
  0x26   : > { %p1103_p11 = scmp.ne.s32.totalorder %s164_s8, %s1102_s16  ;;  %p1108_p13 = scmp.lt.s32.totalorder %s1102_s16, %s1102_s16 }
  0x28   : > { %p1109_p0 = por %p1108_p13, %p1107_p12 }
  0x2a   : > { %p1110_p1 = pnand %p1109_p0, %p1103_p11 }
  0x2c   : > { %1113 = shalt.err (!%p1110_p1)  }
  0x2d   : > { %166 = dma.hbm_to_vmem [thread:$0]  %s1628_s3, 1024, %s164_s8, [#allocation5] }
  0x2e   : > { %1186 = dma.done.wait [#allocation5], 1024 }
  0x2f   : > { %1187 = vsyncadd [#allocation5], 4294966272 }
  0x30 PF: > { %s1313_s19 = sshll.u32 %s1196_s28, 7  ;;  %s1315_s20 = smov 0  }
  0x31 LB: >> { %s180_s21 = sadd.s32 %s1208_s20, %s1313_s19  ;;  %s184_s23 = scalar_lea.vmem [#allocation3], %s1208_s20  ;;  %s1208_s20 = sphi %s1315_s20, %s179_s20  }
  0x32   : >> { %s181_s22 = sld [smem:[#allocation7 + %s180_s21]]  ;;  %s192_s24 = sshll.u32 %s184_s23, 4  ;;  %s193_s24 = int_to_ptr.vmem [resolvable:$true] %s192_s24 }
  0x33   : >> { %s1116_s11 = scalar_lea.hbm %s1629_s4, 2176 }
  0x38   : >> { %s876_s25 = sshll.u32 %s181_s22, 4 }
  0x39   : >> { %s183_s7 = scalar_lea.hbm %s1629_s4, %s876_s25 }
  0x3a   : >> { %s1114_s8 = scalar_lea.hbm %s183_s7, 16  ;;  %p1117_p3 = scmp.lt.u32.totalorder %s183_s7, %s1629_s4 }
  0x3b   : >> { %p1115_p2 = scmp.ne.s32.totalorder %s183_s7, %s1114_s8  ;;  %p1118_p4 = scmp.lt.u32.totalorder %s1116_s11, %s1114_s8 }
  0x3c   : >> { %p1120_p6 = scmp.lt.u32.totalorder %s1114_s8, %s183_s7 }
  0x3d   : >> { %p1119_p5 = por %p1118_p4, %p1117_p3 }
  0x3f   : >> { %p1121_p7 = por %p1120_p6, %p1119_p5 }
  0x41   : >> { %p1122_p8 = pnand %p1121_p7, %p1115_p2 }
  0x43   : >> { %1125 = shalt.err (!%p1122_p8)  }
  0x44   : >> { %s1126_s14 = scalar_lea.vmem %s193_s24, 16  ;;  %s1217_s15 = smov [#allocation3]  }
  0x45   : >> { %p1127_p9 = scmp.ne.s32.totalorder %s193_s24, %s1126_s14  ;;  %s1128_s16 = sshll.u32 %s1217_s15, 4  ;;  %s1129_s16 = int_to_ptr.vmem [resolvable:$false] %s1128_s16 }
  0x46   : >> { %s1130_s17 = scalar_lea.vmem %s1129_s16, 2048  ;;  %p1131_p10 = scmp.lt.s32.totalorder %s193_s24, %s1129_s16 }
  0x47   : >> { %p1132_p11 = scmp.lt.s32.totalorder %s1130_s17, %s1126_s14 }
  0x49   : >> { %p1133_p12 = por %p1132_p11, %p1131_p10 }
  0x4b   : >> { %p1134_p13 = pnand %p1133_p12, %p1127_p9 }
  0x4d   : >> { %1137 = shalt.err (!%p1134_p13)  }
  0x4e   : >> { %195 = dma.hbm_to_vmem [thread:$0]  %s183_s7, 16, %s193_s24, [#allocation5] }
  0x4f   : >> { %s179_s20 = sadd.s32 1, %s1208_s20  }
  0x50   : >> { %p176_p0 = scmp.ge.s32.totalorder %s179_s20, 128  }
  0x51   : > { %s1210_s18 = smov (%p176_p0), 0  }
  0x52   : > { %178 = sbr.rel (!%p176_p0) target bundleno = 49 (0x31), region = 93 }
  0x59 LB: >> { %1188 = dma.done.wait [#allocation5], 16  ;;  %s1212_s18 = sphi %s1210_s18, %s201_s18  }
  0x5a   : >> { %1189 = vsyncadd [#allocation5], 4294967280  ;;  %s201_s18 = sadd.s32 1, %s1212_s18  }
  0x5b   : >> { %p198_p1 = scmp.ge.s32.totalorder %s201_s18, 128  }
  0x5c   : > { %v229_v1 = vld [vmem:[#allocation2] sm:$0xff] (%p198_p1)  ;;  %v230_v2 = vld [vmem:[#allocation2 + $0x8] sm:$0xff] (%p198_p1)  ;;  %v231_v7 = vld [vmem:[#allocation2 + $0x10] sm:$0xff] (%p198_p1)  ;;  %s540_s24 = sadd.s32 (%p198_p1), 128, %s1313_s19 }
  0x5d   : > { %200 = sbr.rel (!%p198_p1) target bundleno = 89 (0x59), region = 104  ;;  %919 = vmatprep.subr.bf16.mxu0 (%p198_p1), %v229_v1  ;;  %951 = vmatprep.subr.bf16.mxu1 (%p198_p1), %v229_v1  ;;  %v205_v3 = vld [vmem:[#allocation3] sm:$0xff] (%p198_p1)  ;;  %v206_v4 = vld [vmem:[#allocation3 + $0x8] sm:$0xff] (%p198_p1)  ;;  %v232_v10 = vld [vmem:[#allocation2 + $0x18] sm:$0xff] (%p198_p1)  ;;  %p879_p2 = scmp.gt.s32.totalorder (%p198_p1), %s540_s24, 240 }
  0x5e   : > { %920 = vmatpush3.bf16.msra.mxu0 (%p198_p1), %v229_v1  ;;  %959 = vmatpush3.bf16.msra.mxu1 (%p198_p1), %v229_v1  ;;  %v213_v5 = vld [vmem:[#allocation3 + $0x40] sm:$0xff] (%p198_p1)  ;;  %v214_v6 = vld [vmem:[#allocation3 + $0x48] sm:$0xff] (%p198_p1)  ;;  %v221_v8 = vpack.c.bf16 (%p198_p1), %v206_v4, %v205_v3  ;;  %v235_v13 = vld [vmem:[#allocation2 + $0x30] sm:$0xff] (%p198_p1) }
  0x5f   : > { %921 = vmatprep.subr.bf16.mxu0 (%p198_p1), %v230_v2  ;;  %952 = vmatprep.subr.bf16.mxu1 (%p198_p1), %v230_v2  ;;  %v225_v9 = vpack.c.bf16 (%p198_p1), %v214_v6, %v213_v5  ;;  %v233_v11 = vld [vmem:[#allocation2 + $0x20] sm:$0xff] (%p198_p1)  ;;  %v234_v12 = vld [vmem:[#allocation2 + $0x28] sm:$0xff] (%p198_p1)  ;;  %v236_v14 = vld [vmem:[#allocation2 + $0x38] sm:$0xff] (%p198_p1) }
  0x60   : > { %935 = vmatprep.mubr.bf16.mxu0 (%p198_p1), %v221_v8  ;;  %v207_v15 = vld [vmem:[#allocation3 + $0x10] sm:$0xff] (%p198_p1)  ;;  %v208_v16 = vld [vmem:[#allocation3 + $0x18] sm:$0xff] (%p198_p1)  ;;  %v209_v19 = vld [vmem:[#allocation3 + $0x20] sm:$0xff] (%p198_p1) }
  0x61   : > { %943 = vmatprep.mubr.bf16.mxu1 (%p198_p1), %v225_v9  ;;  %v215_v17 = vld [vmem:[#allocation3 + $0x50] sm:$0xff] (%p198_p1)  ;;  %v216_v18 = vld [vmem:[#allocation3 + $0x58] sm:$0xff] (%p198_p1)  ;;  %v210_v20 = vld [vmem:[#allocation3 + $0x28] sm:$0xff] (%p198_p1)  ;;  %v222_v23 = vpack.c.bf16 (%p198_p1), %v208_v16, %v207_v15 }
  0x62   : > { %922 = vmatpush3.bf16.msra.mxu0 (%p198_p1), %v230_v2  ;;  %960 = vmatpush3.bf16.msra.mxu1 (%p198_p1), %v230_v2  ;;  %v217_v21 = vld [vmem:[#allocation3 + $0x60] sm:$0xff] (%p198_p1)  ;;  %v218_v22 = vld [vmem:[#allocation3 + $0x68] sm:$0xff] (%p198_p1)  ;;  %v226_v24 = vpack.c.bf16 (%p198_p1), %v216_v18, %v215_v17  ;;  %v223_v25 = vpack.c.bf16 (%p198_p1), %v210_v20, %v209_v19  ;;  %v211_v27 = vld [vmem:[#allocation3 + $0x30] sm:$0xff] (%p198_p1) }
  0x63   : > { %923 = vmatprep.subr.bf16.mxu0 (%p198_p1), %v231_v7  ;;  %953 = vmatprep.subr.bf16.mxu1 (%p198_p1), %v231_v7  ;;  %v227_v26 = vpack.c.bf16 (%p198_p1), %v218_v22, %v217_v21  ;;  %v212_v28 = vld [vmem:[#allocation3 + $0x38] sm:$0xff] (%p198_p1)  ;;  %v219_v29 = vld [vmem:[#allocation3 + $0x70] sm:$0xff] (%p198_p1)  ;;  %v1338_v33 = vld [vmem:[%s1626_s1] ss:$0 sm:$0xff] (%p198_p1) }
  0x64   : > { %v220_v30 = vld [vmem:[#allocation3 + $0x78] sm:$0xff]  ;;  %v224_v31 = vpack.c.bf16 %v212_v28, %v211_v27  ;;  %v1352_v58 = vld [vmem:[%s1627_s2] ss:$0 sm:$0xff] }
  0x65   : > { %v228_v32 = vpack.c.bf16 %v220_v30, %v219_v29 }
  0x66   : > { %924 = vmatpush3.bf16.msra.mxu0 %v231_v7  ;;  %961 = vmatpush3.bf16.msra.mxu1 %v231_v7 }
  0x67   : > { %925 = vmatprep.subr.bf16.mxu0 %v232_v10  ;;  %954 = vmatprep.subr.bf16.mxu1 %v232_v10 }
  0x6a   : > { %926 = vmatpush3.bf16.msra.mxu0 %v232_v10  ;;  %962 = vmatpush3.bf16.msra.mxu1 %v232_v10 }
  0x6b   : > { %927 = vmatprep.subr.bf16.mxu0 %v233_v11  ;;  %955 = vmatprep.subr.bf16.mxu1 %v233_v11 }
  0x6e   : > { %928 = vmatpush3.bf16.msra.mxu0 %v233_v11  ;;  %963 = vmatpush3.bf16.msra.mxu1 %v233_v11 }
  0x6f   : > { %929 = vmatprep.subr.bf16.mxu0 %v234_v12  ;;  %956 = vmatprep.subr.bf16.mxu1 %v234_v12 }
  0x72   : > { %930 = vmatpush3.bf16.msra.mxu0 %v234_v12  ;;  %964 = vmatpush3.bf16.msra.mxu1 %v234_v12 }
  0x73   : > { %931 = vmatprep.subr.bf16.mxu0 %v235_v13  ;;  %957 = vmatprep.subr.bf16.mxu1 %v235_v13 }
  0x76   : > { %932 = vmatpush3.bf16.msra.mxu0 %v235_v13  ;;  %965 = vmatpush3.bf16.msra.mxu1 %v235_v13 }
  0x77   : > { %933 = vmatprep.subr.bf16.mxu0 %v236_v14  ;;  %958 = vmatprep.subr.bf16.mxu1 %v236_v14 }
  0x7a   : > { %934 = vmatpush3.bf16.msra.mxu0 %v236_v14  ;;  %966 = vmatpush3.bf16.msra.mxu1 %v236_v14 }
  0x7d   : > { %936 = vmatmul.mubr.bf16.vlgmr.msra.gmra.mrb[0].mxu0 %v222_v23  ;;  %944 = vmatmul.mubr.bf16.vlgmr.msra.gmra.mrb[0].mxu1 %v226_v24 }
  0x7e   : > { %939 = vmatprep.mubr.bf16.mxu0 %v223_v25  ;;  %947 = vmatprep.mubr.bf16.mxu1 %v227_v26 }
  0x85   : > { %940 = vmatmul.mubr.bf16.gmra.mrb[4].mxu0 %v224_v31  ;;  %948 = vmatmul.mubr.bf16.gmra.mrb[4].mxu1 %v228_v32 }
 0x150   : > { %v937_v34 = vpop.f32.mrb[0].mxu0  ;;  %v945_v35 = vpop.f32.mrb[0].mxu1 }
 0x151   : > { %v287_v36 = vadd.f32 %v937_v34, %v1338_v33  ;;  %v319_v37 = vadd.f32 %v945_v35, %v1338_v33  ;;  %v278_v38 = vpop.f32.mrb[1].mxu0  ;;  %v310_v39 = vpop.f32.mrb[1].mxu1 }
 0x152   : > { %v279_v40 = vadd.f32 %v1338_v33, %v278_v38  ;;  %v311_v41 = vadd.f32 %v1338_v33, %v310_v39  ;;  %v938_v42 = vpop.f32.mrb[2].mxu0  ;;  %v946_v43 = vpop.f32.mrb[2].mxu1 }
 0x153   : > { %1018 = vtanh.f32 %v287_v36  ;;  %v290_v44 = vadd.f32 %v938_v42, %v1338_v33  ;;  %v281_v45 = vpop.f32.mrb[3].mxu0  ;;  %v313_v46 = vpop.f32.mrb[3].mxu1  ;;  %v322_v47 = vadd.f32 %v946_v43, %v1338_v33 }
 0x154   : > { %1020 = vtanh.f32 %v319_v37  ;;  %v314_v48 = vadd.f32 %v1338_v33, %v313_v46  ;;  %v282_v49 = vadd.f32 %v1338_v33, %v281_v45 }
 0x155   : > { %1022 = vtanh.f32 %v279_v40 }
 0x156   : > { %1024 = vtanh.f32 %v311_v41 }
 0x157   : > { %1026 = vtanh.f32 %v290_v44 }
 0x158   : > { %1028 = vtanh.f32 %v322_v47  ;;  %v941_v50 = vpop.f32.mrb[4].mxu0  ;;  %v949_v51 = vpop.f32.mrb[4].mxu1 }
 0x159   : > { %v294_v52 = vpop.f32.mrb[5].mxu0  ;;  %v326_v53 = vpop.f32.mrb[5].mxu1  ;;  %1030 = vtanh.f32 %v314_v48  ;;  %v303_v60 = vadd.f32 %v941_v50, %v1338_v33  ;;  %v335_v20 = vadd.f32 %v949_v51, %v1338_v33 }
 0x15a   : > { %v942_v54 = vpop.f32.mrb[6].mxu0  ;;  %v950_v55 = vpop.f32.mrb[6].mxu1  ;;  %1032 = vtanh.f32 %v282_v49  ;;  %v295_v4 = vadd.f32 %v1338_v33, %v294_v52  ;;  %v327_v12 = vadd.f32 %v1338_v33, %v326_v53 }
 0x15b   : > { %v306_v56 = vadd.f32 %v942_v54, %v1338_v33  ;;  %v297_v57 = vpop.f32.mrb[7].mxu0  ;;  %v329_v59 = vpop.f32.mrb[7].mxu1  ;;  %v338_v19 = vadd.f32 %v950_v55, %v1338_v33 }
 0x15c   : > { %v298_v1 = vadd.f32 %v1338_v33, %v297_v57  ;;  %v330_v11 = vadd.f32 %v1338_v33, %v329_v59 }
 0x15d   : > { %v1019_v61 = vpop.eup %1018  ;;  %1034 = vtanh.f32 %v306_v56 }
 0x15e   : > { %v1021_v62 = vpop.eup %1020  ;;  %v366_v63 = vsub.f32 %v1019_v61, %v1352_v58  ;;  %1036 = vtanh.f32 %v303_v60 }
 0x15f   : > { %v1023_v0 = vpop.eup %1022  ;;  %v374_v2 = vsub.f32 %v1021_v62, %v1352_v58  ;;  %1038 = vtanh.f32 %v298_v1 }
 0x160   : > { %v1025_v3 = vpop.eup %1024  ;;  %v382_v5 = vmul.f32 %v366_v63, %v366_v63  ;;  %v364_v8 = vsub.f32 %v1023_v0, %v1352_v58  ;;  %1040 = vtanh.f32 %v295_v4 }
 0x161   : > { %v1027_v6 = vpop.eup %1026  ;;  %v390_v7 = vmul.f32 %v374_v2, %v374_v2  ;;  %v372_v17 = vsub.f32 %v1025_v3, %v1352_v58  ;;  %1042 = vtanh.f32 %v330_v11 }
 0x162   : > { %v1029_v9 = vpop.eup %1028  ;;  %400 = vadd.xlane.f32.xlu1 %v382_v5  ;;  %v367_v10 = vsub.f32 %v1027_v6, %v1352_v58  ;;  %v380_v16 = vmul.f32 %v364_v8, %v364_v8  ;;  %1044 = vtanh.f32 %v327_v12 }
 0x163   : > { %416 = vadd.xlane.f32.xlu0 %v390_v7  ;;  %v375_v14 = vsub.f32 %v1029_v9, %v1352_v58  ;;  %v1031_v15 = vpop.eup %1030  ;;  %v388_v24 = vmul.f32 %v372_v17, %v372_v17  ;;  %1046 = vtanh.f32 %v338_v19 }
 0x164   : > { %v383_v13 = vmul.f32 %v367_v10, %v367_v10  ;;  %v1033_v18 = vpop.eup %1032  ;;  %v373_v22 = vsub.f32 %v1031_v15, %v1352_v58  ;;  %1048 = vtanh.f32 %v335_v20 }
 0x165   : > { %v391_v21 = vmul.f32 %v375_v14, %v375_v14  ;;  %v365_v25 = vsub.f32 %v1033_v18, %v1352_v58 }
 0x166   : > { %402 = vadd.xlane.f32.xlu1 %v383_v13  ;;  %v389_v27 = vmul.f32 %v373_v22, %v373_v22 }
 0x167   : > { %396 = vadd.xlane.f32.xlu0 %v380_v16  ;;  %v1035_v23 = vpop.eup %1034  ;;  %v381_v30 = vmul.f32 %v365_v25, %v365_v25 }
 0x168   : > { %v1037_v26 = vpop.eup %1036  ;;  %v371_v28 = vsub.f32 %v1035_v23, %v1352_v58 }
 0x169   : > { %v1039_v29 = vpop.eup %1038  ;;  %v370_v31 = vsub.f32 %v1037_v26, %v1352_v58 }
 0x16a   : > { %418 = vadd.xlane.f32.xlu1 %v391_v21  ;;  %v1041_v32 = vpop.eup %1040  ;;  %v387_v33 = vmul.f32 %v371_v28, %v371_v28  ;;  %v369_v34 = vsub.f32 %v1039_v29, %v1352_v58 }
 0x16b   : > { %412 = vadd.xlane.f32.xlu0 %v388_v24  ;;  %v1043_v35 = vpop.eup %1042  ;;  %v386_v36 = vmul.f32 %v370_v31, %v370_v31  ;;  %v368_v37 = vsub.f32 %v1041_v32, %v1352_v58 }
 0x16c   : > { %v1045_v38 = vpop.eup %1044  ;;  %v385_v39 = vmul.f32 %v369_v34, %v369_v34  ;;  %v377_v40 = vsub.f32 %v1043_v35, %v1352_v58 }
 0x16d   : > { %v1047_v41 = vpop.eup %1046  ;;  %v384_v42 = vmul.f32 %v368_v37, %v368_v37  ;;  %v376_v43 = vsub.f32 %v1045_v38, %v1352_v58 }
 0x16e   : > { %414 = vadd.xlane.f32.xlu1 %v389_v27  ;;  %v1049_v44 = vpop.eup %1048  ;;  %v393_v45 = vmul.f32 %v377_v40, %v377_v40  ;;  %v379_v46 = vsub.f32 %v1047_v41, %v1352_v58 }
 0x16f   : > { %398 = vadd.xlane.f32.xlu0 %v381_v30  ;;  %v392_v47 = vmul.f32 %v376_v43, %v376_v43  ;;  %v378_v48 = vsub.f32 %v1049_v44, %v1352_v58 }
 0x170   : > { %v395_v49 = vmul.f32 %v379_v46, %v379_v46 }
 0x171   : > { %v394_v50 = vmul.f32 %v378_v48, %v378_v48 }
 0x172   : > { %410 = vadd.xlane.f32.xlu1 %v387_v33 }
 0x173   : > { %408 = vadd.xlane.f32.xlu0 %v386_v36 }
 0x176   : > { %406 = vadd.xlane.f32.xlu1 %v385_v39 }
 0x177   : > { %404 = vadd.xlane.f32.xlu0 %v384_v42 }
 0x17a   : > { %422 = vadd.xlane.f32.xlu1 %v393_v45 }
 0x17b   : > { %420 = vadd.xlane.f32.xlu0 %v392_v47 }
 0x17e   : > { %426 = vadd.xlane.f32.xlu1 %v395_v49 }
 0x17f   : > { %424 = vadd.xlane.f32.xlu0 %v394_v50 }
 0x1ef   : > { %v401_v51 = vpop.xlane.xlu1 %400 }
 0x1f0   : > { %v417_v52 = vpop.xlane.xlu0 %416  ;;  %1050 = vrsqrt.f32 %v401_v51  ;;  %vm444_vm1 = vcmp.eq.f32.partialorder %v401_v51, inf  ;;  %vm446_vm2 = vcmp.eq.f32.partialorder %v401_v51, 0.0  ;;  %v447_v62 = vand.u32 2147483648, %v401_v51 }
 0x1f1   : > { %1052 = vrsqrt.f32 %v417_v52  ;;  %vm500_vm3 = vcmp.eq.f32.partialorder %v417_v52, inf  ;;  %v503_v0 = vand.u32 2147483648, %v417_v52  ;;  %vm502_vm4 = vcmp.eq.f32.partialorder %v417_v52, 0.0 }
 0x1f3   : > { %v403_v53 = vpop.xlane.xlu1 %402 }
 0x1f4   : > { %1054 = vrsqrt.f32 %v403_v53  ;;  %v397_v54 = vpop.xlane.xlu0 %396  ;;  %vm451_vm5 = vcmp.eq.f32.partialorder %v403_v53, inf  ;;  %vm453_vm6 = vcmp.eq.f32.partialorder %v403_v53, 0.0  ;;  %v454_v9 = vand.u32 2147483648, %v403_v53 }
 0x1f5   : > { %1056 = vrsqrt.f32 %v397_v54  ;;  %vm430_vm7 = vcmp.eq.f32.partialorder %v397_v54, inf  ;;  %v433_v13 = vand.u32 2147483648, %v397_v54  ;;  %vm432_vm8 = vcmp.eq.f32.partialorder %v397_v54, 0.0 }
 0x1f7   : > { %v419_v55 = vpop.xlane.xlu1 %418 }
 0x1f8   : > { %1058 = vrsqrt.f32 %v419_v55  ;;  %v413_v56 = vpop.xlane.xlu0 %412  ;;  %vm507_vm9 = vcmp.eq.f32.partialorder %v419_v55, inf  ;;  %vm509_vm10 = vcmp.eq.f32.partialorder %v419_v55, 0.0  ;;  %v510_v21 = vand.u32 2147483648, %v419_v55 }
 0x1f9   : > { %1060 = vrsqrt.f32 %v413_v56  ;;  %vm486_vm11 = vcmp.eq.f32.partialorder %v413_v56, inf  ;;  %v489_v25 = vand.u32 2147483648, %v413_v56  ;;  %vm488_vm12 = vcmp.eq.f32.partialorder %v413_v56, 0.0 }
 0x1fa   : > { %v1051_v57 = vpop.eup %1050 }
 0x1fb   : > { %v1053_v58 = vpop.eup %1052  ;;  %v443_v59 = vmul.f32 %v1051_v57, %v401_v51  ;;  %v1378_v60 = vpop.xlane.xlu1 %414 }
 0x1fc   : > { %v499_v61 = vmul.f32 %v1053_v58, %v417_v52  ;;  %1062 = vrsqrt.f32 %v1378_v60  ;;  %v1381_v63 = vpop.xlane.xlu0 %398  ;;  %vm493_vm13 = vcmp.eq.f32.partialorder %v1378_v60, inf  ;;  %vm495_vm14 = vcmp.eq.f32.partialorder %v1378_v60, 0.0 }
 0x1fd   : > { %v445_v1 = vsel %vm444_vm1, %v401_v51, %v443_v59  ;;  %1064 = vrsqrt.f32 %v1381_v63  ;;  %v496_v33 = vand.u32 2147483648, %v1378_v60  ;;  %vm437_vm15 = vcmp.eq.f32.partialorder %v1381_v63, inf }
 0x1fe   : > { %v1055_v2 = vpop.eup %1054  ;;  %v501_v3 = vsel %vm500_vm3, %v417_v52, %v499_v61  ;;  %v1384_v4 = vsel %vm446_vm2, %v447_v62, %v445_v1  ;;  %v440_v37 = vand.u32 2147483648, %v1381_v63  ;;  %vm439_vm0 = vcmp.eq.f32.partialorder %v1381_v63, 0.0 }
 0x1ff   : > { %v1057_v5 = vpop.eup %1056  ;;  %v1386_v6 = vsel %vm502_vm4, %v503_v0, %v501_v3  ;;  %v450_v7 = vmul.f32 %v1055_v2, %v403_v53  ;;  %v1388_v8 = vpop.xlane.xlu1 %410 }
 0x200   : > { %v429_v10 = vmul.f32 %v1057_v5, %v397_v54  ;;  %1066 = vrsqrt.f32 %v1388_v8  ;;  %v1391_v11 = vpop.xlane.xlu0 %408  ;;  %vm479_vm1 = vcmp.eq.f32.partialorder %v1388_v8, inf  ;;  %vm481_vm2 = vcmp.eq.f32.partialorder %v1388_v8, 0.0 }
 0x201   : > { %v452_v12 = vsel %vm451_vm5, %v403_v53, %v450_v7  ;;  %1068 = vrsqrt.f32 %v1391_v11  ;;  %v482_v45 = vand.u32 2147483648, %v1388_v8  ;;  %vm472_vm3 = vcmp.eq.f32.partialorder %v1391_v11, inf }
 0x202   : > { %v1059_v14 = vpop.eup %1058  ;;  %v1394_v15 = vsel %vm453_vm6, %v454_v9, %v452_v12  ;;  %v431_v16 = vsel %vm430_vm7, %v397_v54, %v429_v10  ;;  %v475_v49 = vand.u32 2147483648, %v1391_v11  ;;  %vm474_vm4 = vcmp.eq.f32.partialorder %v1391_v11, 0.0 }
 0x203   : > { %v1061_v17 = vpop.eup %1060  ;;  %v1396_v18 = vsel %vm432_vm8, %v433_v13, %v431_v16  ;;  %v506_v19 = vmul.f32 %v1059_v14, %v419_v55  ;;  %v1398_v20 = vpop.xlane.xlu1 %406 }
 0x204   : > { %v485_v22 = vmul.f32 %v1061_v17, %v413_v56  ;;  %1070 = vrsqrt.f32 %v1398_v20  ;;  %v405_v23 = vpop.xlane.xlu0 %404  ;;  %vm465_vm5 = vcmp.eq.f32.partialorder %v1398_v20, inf  ;;  %vm467_vm6 = vcmp.eq.f32.partialorder %v1398_v20, 0.0 }
 0x205   : > { %v508_v24 = vsel %vm507_vm9, %v419_v55, %v506_v19  ;;  %1072 = vrsqrt.f32 %v405_v23  ;;  %vm458_vm7 = vcmp.eq.f32.partialorder %v405_v23, inf  ;;  %v461_v59 = vand.u32 2147483648, %v405_v23 }
 0x206   : > { %v1063_v26 = vpop.eup %1062  ;;  %v1401_v27 = vsel %vm509_vm10, %v510_v21, %v508_v24  ;;  %v487_v28 = vsel %vm486_vm11, %v413_v56, %v485_v22  ;;  %v468_v56 = vand.u32 2147483648, %v1398_v20  ;;  %vm460_vm8 = vcmp.eq.f32.partialorder %v405_v23, 0.0  ;;  %v547_v24 = vld [vmem:[#allocation4 + $0x8] sm:$0xff] (!%p879_p2) }
 0x207   : > { %v1065_v29 = vpop.eup %1064  ;;  %v1403_v30 = vsel %vm488_vm12, %v489_v25, %v487_v28  ;;  %v492_v31 = vmul.f32 %v1063_v26, %v1378_v60  ;;  %v423_v32 = vpop.xlane.xlu1 %422  ;;  %v548_v25 = vld [vmem:[#allocation4 + $0x10] sm:$0xff] (!%p879_p2) }
 0x208   : > { %v436_v34 = vmul.f32 %v1065_v29, %v1381_v63  ;;  %1074 = vrsqrt.f32 %v423_v32  ;;  %v421_v35 = vpop.xlane.xlu0 %420  ;;  %vm521_vm9 = vcmp.eq.f32.partialorder %v423_v32, inf  ;;  %v524_v2 = vand.u32 2147483648, %v423_v32 }
 0x209   : > { %v494_v36 = vsel %vm493_vm13, %v1378_v60, %v492_v31  ;;  %1076 = vrsqrt.f32 %v421_v35  ;;  %vm523_vm10 = vcmp.eq.f32.partialorder %v423_v32, 0.0  ;;  %vm514_vm11 = vcmp.eq.f32.partialorder %v421_v35, inf  ;;  %v549_v31 = vld [vmem:[#allocation4 + $0x18] sm:$0xff] (!%p879_p2) }
 0x20a   : > { %v1067_v38 = vpop.eup %1066  ;;  %v1413_v39 = vsel %vm495_vm14, %v496_v33, %v494_v36  ;;  %v438_v40 = vsel %vm437_vm15, %v1381_v63, %v436_v34  ;;  %v517_v7 = vand.u32 2147483648, %v421_v35  ;;  %vm516_vm12 = vcmp.eq.f32.partialorder %v421_v35, 0.0  ;;  %v551_v33 = vld [vmem:[#allocation4 + $0x28] sm:$0xff] (!%p879_p2) }
 0x20b   : > { %v1069_v41 = vpop.eup %1068  ;;  %v1417_v42 = vsel %vm439_vm0, %v440_v37, %v438_v40  ;;  %v478_v43 = vmul.f32 %v1067_v38, %v1388_v8  ;;  %v427_v44 = vpop.xlane.xlu1 %426  ;;  %v564_v29 = vadd.f32 (!%p879_p2), %v548_v25, %v1384_v4  ;;  %v565_v34 = vadd.f32 (!%p879_p2), %v549_v31, %v1394_v15  ;;  %v552_v37 = vld [vmem:[#allocation4 + $0x30] sm:$0xff] (!%p879_p2)  ;;  %v553_v38 = vld [vmem:[#allocation4 + $0x38] sm:$0xff] (!%p879_p2)  ;;  %v554_v40 = vld [vmem:[#allocation4 + $0x40] sm:$0xff] (!%p879_p2) }
 0x20c   : > { %v471_v46 = vmul.f32 %v1069_v41, %v1391_v11  ;;  %1078 = vrsqrt.f32 %v427_v44  ;;  %v425_v47 = vpop.xlane.xlu0 %424  ;;  %vm535_vm13 = vcmp.eq.f32.partialorder %v427_v44, inf  ;;  %v538_v14 = vand.u32 2147483648, %v427_v44 }
 0x20d   : > { %v480_v48 = vsel %vm479_vm1, %v1388_v8, %v478_v43  ;;  %1080 = vrsqrt.f32 %v425_v47  ;;  %vm537_vm14 = vcmp.eq.f32.partialorder %v427_v44, 0.0  ;;  %vm528_vm15 = vcmp.eq.f32.partialorder %v425_v47, inf }
 0x20e   : > { %v1071_v50 = vpop.eup %1070  ;;  %v1427_v51 = vsel %vm481_vm2, %v482_v45, %v480_v48  ;;  %v473_v52 = vsel %vm472_vm3, %v1391_v11, %v471_v46  ;;  %v531_v19 = vand.u32 2147483648, %v425_v47  ;;  %vm530_vm0 = vcmp.eq.f32.partialorder %v425_v47, 0.0  ;;  %v555_v45 = vld [vmem:[#allocation4 + $0x48] sm:$0xff] (!%p879_p2)  ;;  %v556_v46 = vld [vmem:[#allocation4 + $0x50] sm:$0xff] (!%p879_p2) }
 0x20f   : > { %v1073_v53 = vpop.eup %1072  ;;  %v1431_v54 = vsel %vm474_vm4, %v475_v49, %v473_v52  ;;  %v464_v55 = vmul.f32 %v1071_v50, %v1398_v20  ;;  %vm578_vm1 = vcmask (!%p879_p2), 7168   ;;  %v563_v28 = vadd.f32 (!%p879_p2), %v547_v24, %v1417_v42  ;;  %v558_v52 = vld [vmem:[#allocation4 + $0x60] sm:$0xff] (!%p879_p2) }
 0x210   : > { %v457_v57 = vmul.f32 %v1073_v53, %v405_v23  ;;  %581 = vst.msk [vmem:[#allocation4 + $0x10] sm:$0xff] (!%p879_p2), %vm578_vm1, %v564_v29  ;;  %v568_v41 = vadd.f32 (!%p879_p2), %v552_v37, %v1431_v54  ;;  %v569_v43 = vadd.f32 (!%p879_p2), %v553_v38, %v1427_v51  ;;  %582 = vst.msk [vmem:[#allocation4 + $0x18] sm:$0xff] (!%p879_p2), %vm578_vm1, %v565_v34  ;;  %v559_v53 = vld [vmem:[#allocation4 + $0x68] sm:$0xff] (!%p879_p2) }
 0x211   : > { %v466_v58 = vsel %vm465_vm5, %v1398_v20, %v464_v55  ;;  %580 = vst.msk [vmem:[#allocation4 + $0x8] sm:$0xff] (!%p879_p2), %vm578_vm1, %v563_v28  ;;  %v571_v48 = vadd.f32 (!%p879_p2), %v555_v45, %v1413_v39  ;;  %v572_v49 = vadd.f32 (!%p879_p2), %v556_v46, %v1386_v6  ;;  %v560_v55 = vld [vmem:[#allocation4 + $0x70] sm:$0xff] (!%p879_p2) }
 0x212   : > { %v1075_v60 = vpop.eup %1074  ;;  %v1438_v61 = vsel %vm467_vm6, %v468_v56, %v466_v58  ;;  %v459_v62 = vsel %vm458_vm7, %v405_v23, %v457_v57  ;;  %v546_v23 = vld [vmem:[#allocation4] sm:$0xff] (!%p879_p2)  ;;  %585 = vst.msk [vmem:[#allocation4 + $0x30] sm:$0xff] (!%p879_p2), %vm578_vm1, %v568_v41  ;;  %586 = vst.msk [vmem:[#allocation4 + $0x38] sm:$0xff] (!%p879_p2), %vm578_vm1, %v569_v43 }
 0x213   : > { %v1077_v63 = vpop.eup %1076  ;;  %v1440_v0 = vsel %vm460_vm8, %v461_v59, %v459_v62  ;;  %v520_v1 = vmul.f32 %v1075_v60, %v423_v32  ;;  %v562_v26 = vadd.f32 (!%p879_p2), %v546_v23, %v1396_v18  ;;  %v567_v36 = vadd.f32 (!%p879_p2), %v551_v33, %v1438_v61  ;;  %v561_v59 = vld [vmem:[#allocation4 + $0x78] sm:$0xff] (!%p879_p2)  ;;  %588 = vst.msk [vmem:[#allocation4 + $0x48] sm:$0xff] (!%p879_p2), %vm578_vm1, %v571_v48 }
 0x214   : > { %v513_v3 = vmul.f32 %v1077_v63, %v421_v35  ;;  %589 = vst.msk [vmem:[#allocation4 + $0x50] sm:$0xff] (!%p879_p2), %vm578_vm1, %v572_v49 }
 0x215   : > { %v522_v5 = vsel %vm521_vm9, %v423_v32, %v520_v1  ;;  %545 = sbr.rel (%p879_p2) target bundleno = 543 (0x21f), region = 58  ;;  %v550_v32 = vld [vmem:[#allocation4 + $0x20] sm:$0xff] (!%p879_p2)  ;;  %579 = vst.msk [vmem:[#allocation4] sm:$0xff] (!%p879_p2), %vm578_vm1, %v562_v26  ;;  %584 = vst.msk [vmem:[#allocation4 + $0x28] sm:$0xff] (!%p879_p2), %vm578_vm1, %v567_v36 }
 0x216   : > { %v1079_v8 = vpop.eup %1078  ;;  %v1442_v9 = vsel %vm523_vm10, %v524_v2, %v522_v5  ;;  %v515_v10 = vsel %vm514_vm11, %v421_v35, %v513_v3  ;;  %v566_v35 = vadd.f32 (!%p879_p2), %v550_v32, %v1440_v0 }
 0x217   : > { %v1081_v11 = vpop.eup %1080  ;;  %v1444_v12 = vsel %vm516_vm12, %v517_v7, %v515_v10  ;;  %v534_v13 = vmul.f32 %v1079_v8, %v427_v44  ;;  %v575_v57 = vadd.f32 (!%p879_p2), %v559_v53, %v1442_v9 }
 0x218   : > { %v527_v16 = vmul.f32 %v1081_v11, %v425_v47  ;;  %583 = vst.msk [vmem:[#allocation4 + $0x20] sm:$0xff] (!%p879_p2), %vm578_vm1, %v566_v35  ;;  %v574_v56 = vadd.f32 (!%p879_p2), %v558_v52, %v1444_v12 }
 0x219   : > { %v536_v17 = vsel %vm535_vm13, %v427_v44, %v534_v13  ;;  %v570_v44 = vadd.f32 (!%p879_p2), %v554_v40, %v1403_v30  ;;  %592 = vst.msk [vmem:[#allocation4 + $0x68] sm:$0xff] (!%p879_p2), %vm578_vm1, %v575_v57 }
 0x21a   : > { %v1446_v20 = vsel %vm537_vm14, %v538_v14, %v536_v17  ;;  %v529_v21 = vsel %vm528_vm15, %v425_v47, %v527_v16  ;;  %v557_v47 = vld [vmem:[#allocation4 + $0x58] sm:$0xff] (!%p879_p2)  ;;  %591 = vst.msk [vmem:[#allocation4 + $0x60] sm:$0xff] (!%p879_p2), %vm578_vm1, %v574_v56 }
 0x21b   : > { %v1448_v22 = vsel %vm530_vm0, %v531_v19, %v529_v21  ;;  %v573_v50 = vadd.f32 (!%p879_p2), %v557_v47, %v1401_v27  ;;  %587 = vst.msk [vmem:[#allocation4 + $0x40] sm:$0xff] (!%p879_p2), %vm578_vm1, %v570_v44  ;;  %v577_v60 = vadd.f32 (!%p879_p2), %v561_v59, %v1446_v20 }
 0x21c   : > { %v576_v58 = vadd.f32 %v560_v55, %v1448_v22 }
 0x21d   : > { %590 = vst.msk [vmem:[#allocation4 + $0x58] sm:$0xff] %vm578_vm1, %v573_v50  ;;  %594 = vst.msk [vmem:[#allocation4 + $0x78] sm:$0xff] %vm578_vm1, %v577_v60 }
 0x21e   : > { %593 = vst.msk [vmem:[#allocation4 + $0x70] sm:$0xff] %vm578_vm1, %v576_v58 }
 0x21f PF: > { %p880_p3 = scmp.le.s32.totalorder %s540_s24, 240 }
 0x220   : > { %v598_v62 = vlaneseq (!%p880_p3)  ;;  %v1487_v63 = vstv (!%p880_p3), %s1313_s19  ;;  %vm728_vm2 = vcmask (!%p880_p3), 7168   ;;  %v632_v19 = vld [vmem:[#allocation4] sm:$0xff] (!%p880_p3)  ;;  %v1218_v21 = vmov (!%p880_p3), 0.0   ;;  %v633_v29 = vld [vmem:[#allocation4 + $0x8] sm:$0xff] (!%p880_p3)  ;;  %v634_v32 = vld [vmem:[#allocation4 + $0x10] sm:$0xff] (!%p880_p3) }
 0x221   : > { %597 = sbr.rel (%p880_p3) target bundleno = 578 (0x242), region = 62  ;;  %v635_v34 = vld [vmem:[#allocation4 + $0x18] sm:$0xff] (!%p880_p3)  ;;  %v637_v48 = vld [vmem:[#allocation4 + $0x28] sm:$0xff] (!%p880_p3) }
 0x222   : > { %v1489_v1 = vshrl.u32 (!%p880_p3), %v598_v62, 7  ;;  %v636_v40 = vld [vmem:[#allocation4 + $0x20] sm:$0xff] (!%p880_p3)  ;;  %v639_v53 = vld [vmem:[#allocation4 + $0x38] sm:$0xff] (!%p880_p3) }
 0x224   : > { %v616_v2 = vadd.s32 (!%p880_p3), %v1487_v63, %v1489_v1  ;;  %v600_v3 = vadd.s32 (!%p880_p3), 8, %v1489_v1  ;;  %v601_v5 = vadd.s32 (!%p880_p3), 16, %v1489_v1  ;;  %v602_v7 = vadd.s32 (!%p880_p3), 24, %v1489_v1 }
 0x225   : > { %v603_v8 = vadd.s32 (!%p880_p3), 32, %v1489_v1  ;;  %v604_v10 = vadd.s32 (!%p880_p3), 40, %v1489_v1  ;;  %v605_v11 = vadd.s32 (!%p880_p3), 48, %v1489_v1  ;;  %v606_v13 = vadd.s32 (!%p880_p3), 56, %v1489_v1 }
 0x226   : > { %vm648_vm3 = vcmp.lt.s32.totalorder (!%p880_p3), %v616_v2, 240  ;;  %v617_v14 = vadd.s32 (!%p880_p3), %v1487_v63, %v600_v3  ;;  %v618_v16 = vadd.s32 (!%p880_p3), %v1487_v63, %v601_v5  ;;  %v619_v17 = vadd.s32 (!%p880_p3), %v1487_v63, %v602_v7  ;;  %v640_v5 = vld [vmem:[#allocation4 + $0x40] sm:$0xff] (!%p880_p3) }
 0x227   : > { %v881_v23 = vsel (!%p880_p3), %vm648_vm3, 1.0, %v1218_v21  ;;  %v620_v24 = vadd.s32 (!%p880_p3), %v1487_v63, %v603_v8  ;;  %v621_v25 = vadd.s32 (!%p880_p3), %v1487_v63, %v604_v10  ;;  %v622_v26 = vadd.s32 (!%p880_p3), %v1487_v63, %v605_v11 }
 0x228   : > { %v696_v28 = vmul.f32 %v881_v23, %v1396_v18  ;;  %vm649_vm4 = vcmp.lt.s32.totalorder %v617_v14, 240  ;;  %vm650_vm5 = vcmp.lt.s32.totalorder %v618_v16, 240  ;;  %vm651_vm6 = vcmp.lt.s32.totalorder %v619_v17, 240  ;;  %v641_v16 = vld [vmem:[#allocation4 + $0x48] sm:$0xff] }
 0x229   : > { %v882_v31 = vsel %vm649_vm4, 1.0, %v1218_v21  ;;  %v883_v33 = vsel %vm650_vm5, 1.0, %v1218_v21  ;;  %v884_v35 = vsel %vm651_vm6, 1.0, %v1218_v21  ;;  %vm652_vm7 = vcmp.lt.s32.totalorder %v620_v24, 240 }
 0x22a   : > { %v712_v36 = vadd.f32 %v696_v28, %v632_v19  ;;  %v697_v37 = vmul.f32 %v882_v31, %v1417_v42  ;;  %v698_v38 = vmul.f32 %v883_v33, %v1384_v4  ;;  %v699_v18 = vmul.f32 %v884_v35, %v1394_v15  ;;  %v638_v4 = vld [vmem:[#allocation4 + $0x30] sm:$0xff]  ;;  %v643_v28 = vld [vmem:[#allocation4 + $0x58] sm:$0xff]  ;;  %v644_v31 = vld [vmem:[#allocation4 + $0x60] sm:$0xff] }
 0x22b   : > { %v885_v41 = vsel %vm652_vm7, 1.0, %v1218_v21  ;;  %vm653_vm8 = vcmp.lt.s32.totalorder %v621_v25, 240  ;;  %vm654_vm9 = vcmp.lt.s32.totalorder %v622_v26, 240  ;;  %v623_v43 = vadd.s32 %v1487_v63, %v606_v13  ;;  %v642_v19 = vld [vmem:[#allocation4 + $0x50] sm:$0xff] }
 0x22c   : > { %729 = vst.msk [vmem:[#allocation4] sm:$0xff] %vm728_vm2, %v712_v36  ;;  %v713_v44 = vadd.f32 %v697_v37, %v633_v29  ;;  %v714_v45 = vadd.f32 %v698_v38, %v634_v32  ;;  %v715_v46 = vadd.f32 %v699_v18, %v635_v34  ;;  %v700_v47 = vmul.f32 %v885_v41, %v1440_v0  ;;  %v645_v38 = vld [vmem:[#allocation4 + $0x68] sm:$0xff] }
 0x22d   : > { %v886_v42 = vsel %vm653_vm8, 1.0, %v1218_v21  ;;  %v887_v15 = vsel %vm654_vm9, 1.0, %v1218_v21  ;;  %vm655_vm10 = vcmp.lt.s32.totalorder %v623_v43, 240  ;;  %v607_v49 = vadd.s32 64, %v1489_v1 }
 0x22e   : > { %730 = vst.msk [vmem:[#allocation4 + $0x8] sm:$0xff] %vm728_vm2, %v713_v44  ;;  %731 = vst.msk [vmem:[#allocation4 + $0x10] sm:$0xff] %vm728_vm2, %v714_v45  ;;  %v716_v50 = vadd.f32 %v700_v47, %v636_v40  ;;  %v701_v52 = vmul.f32 %v886_v42, %v1438_v61  ;;  %v702_v0 = vmul.f32 %v887_v15, %v1431_v54  ;;  %v888_v55 = vsel %vm655_vm10, 1.0, %v1218_v21  ;;  %v646_v40 = vld [vmem:[#allocation4 + $0x70] sm:$0xff] }
 0x22f   : > { %732 = vst.msk [vmem:[#allocation4 + $0x18] sm:$0xff] %vm728_vm2, %v715_v46  ;;  %v703_v56 = vmul.f32 %v888_v55, %v1427_v51  ;;  %v624_v57 = vadd.s32 %v1487_v63, %v607_v49  ;;  %v608_v58 = vadd.s32 72, %v1489_v1  ;;  %v609_v59 = vadd.s32 80, %v1489_v1  ;;  %v647_v46 = vld [vmem:[#allocation4 + $0x78] sm:$0xff] }
 0x230   : > { %733 = vst.msk [vmem:[#allocation4 + $0x20] sm:$0xff] %vm728_vm2, %v716_v50  ;;  %v717_v60 = vadd.f32 %v701_v52, %v637_v48  ;;  %v718_v62 = vadd.f32 %v702_v0, %v638_v4  ;;  %v610_v2 = vadd.s32 88, %v1489_v1  ;;  %v611_v61 = vadd.s32 96, %v1489_v1 }
 0x231   : > { %v719_v54 = vadd.f32 %v703_v56, %v639_v53  ;;  %vm656_vm11 = vcmp.lt.s32.totalorder %v624_v57, 240  ;;  %v625_v3 = vadd.s32 %v1487_v63, %v608_v58  ;;  %v626_v51 = vadd.s32 %v1487_v63, %v609_v59 }
 0x232   : > { %734 = vst.msk [vmem:[#allocation4 + $0x28] sm:$0xff] %vm728_vm2, %v717_v60  ;;  %735 = vst.msk [vmem:[#allocation4 + $0x30] sm:$0xff] %vm728_vm2, %v718_v62  ;;  %v889_v7 = vsel %vm656_vm11, 1.0, %v1218_v21  ;;  %v627_v8 = vadd.s32 %v1487_v63, %v610_v2  ;;  %v628_v10 = vadd.s32 %v1487_v63, %v611_v61  ;;  %v612_v11 = vadd.s32 104, %v1489_v1 }
 0x233   : > { %736 = vst.msk [vmem:[#allocation4 + $0x38] sm:$0xff] %vm728_vm2, %v719_v54  ;;  %v704_v13 = vmul.f32 %v889_v7, %v1403_v30  ;;  %vm657_vm12 = vcmp.lt.s32.totalorder %v625_v3, 240  ;;  %vm658_vm13 = vcmp.lt.s32.totalorder %v626_v51, 240  ;;  %v613_v14 = vadd.s32 112, %v1489_v1 }
 0x234   : > { %v890_v17 = vsel %vm657_vm12, 1.0, %v1218_v21  ;;  %v891_v23 = vsel %vm658_vm13, 1.0, %v1218_v21  ;;  %vm659_vm14 = vcmp.lt.s32.totalorder %v627_v8, 240  ;;  %vm660_vm15 = vcmp.lt.s32.totalorder %v628_v10, 240 }
 0x235   : > { %v720_v24 = vadd.f32 %v704_v13, %v640_v5  ;;  %v705_v25 = vmul.f32 %v890_v17, %v1413_v39  ;;  %v706_v26 = vmul.f32 %v891_v23, %v1386_v6  ;;  %v892_v30 = vsel %vm659_vm14, 1.0, %v1218_v21 }
 0x236   : > { %v707_v29 = vmul.f32 %v892_v30, %v1401_v27  ;;  %v893_v32 = vsel %vm660_vm15, 1.0, %v1218_v21  ;;  %v629_v33 = vadd.s32 %v1487_v63, %v612_v11  ;;  %v630_v34 = vadd.s32 %v1487_v63, %v613_v14 }
 0x237   : > { %737 = vst.msk [vmem:[#allocation4 + $0x40] sm:$0xff] %vm728_vm2, %v720_v24  ;;  %v721_v35 = vadd.f32 %v705_v25, %v641_v16  ;;  %v722_v36 = vadd.f32 %v706_v26, %v642_v19  ;;  %v708_v39 = vmul.f32 %v893_v32, %v1444_v12  ;;  %v614_v6 = vadd.s32 120, %v1489_v1 }
 0x238   : > { %v723_v37 = vadd.f32 %v707_v29, %v643_v28  ;;  %vm661_vm0 = vcmp.lt.s32.totalorder %v629_v33, 240  ;;  %vm662_vm1 = vcmp.lt.s32.totalorder %v630_v34, 240 }
 0x239   : > { %738 = vst.msk [vmem:[#allocation4 + $0x48] sm:$0xff] %vm728_vm2, %v721_v35  ;;  %739 = vst.msk [vmem:[#allocation4 + $0x50] sm:$0xff] %vm728_vm2, %v722_v36  ;;  %v724_v27 = vadd.f32 %v708_v39, %v644_v31  ;;  %v894_v18 = vsel %vm661_vm0, 1.0, %v1218_v21  ;;  %v895_v41 = vsel %vm662_vm1, 1.0, %v1218_v21  ;;  %v631_v43 = vadd.s32 %v1487_v63, %v614_v6 }
 0x23a   : > { %740 = vst.msk [vmem:[#allocation4 + $0x58] sm:$0xff] %vm728_vm2, %v723_v37  ;;  %v709_v12 = vmul.f32 %v894_v18, %v1442_v9  ;;  %v710_v1 = vmul.f32 %v895_v41, %v1448_v22 }
 0x23b   : > { %741 = vst.msk [vmem:[#allocation4 + $0x60] sm:$0xff] %vm728_vm2, %v724_v27  ;;  %vm663_vm3 = vcmp.lt.s32.totalorder %v631_v43, 240 }
 0x23c   : > { %v725_v44 = vadd.f32 %v709_v12, %v645_v38  ;;  %v726_v45 = vadd.f32 %v710_v1, %v646_v40  ;;  %v896_v47 = vsel %vm663_vm3, 1.0, %v1218_v21 }
 0x23d   : > { %v711_v48 = vmul.f32 %v896_v47, %v1446_v20 }
 0x23e   : > { %742 = vst.msk [vmem:[#allocation4 + $0x68] sm:$0xff] %vm728_vm2, %v725_v44  ;;  %743 = vst.msk [vmem:[#allocation4 + $0x70] sm:$0xff] %vm728_vm2, %v726_v45 }
 0x23f   : > { %v727_v63 = vadd.f32 %v711_v48, %v647_v46 }
 0x241   : > { %744 = vst.msk [vmem:[#allocation4 + $0x78] sm:$0xff] %vm728_vm2, %v727_v63 }
 0x242 PF: > { %p897_p4 = scmp.ne.s32.totalorder %s1196_s28, 1 }
 0x243   : > { %v749_v9 = vld [vmem:[#allocation4] sm:$0xff] (!%p897_p4)  ;;  %v750_v22 = vld [vmem:[#allocation4 + $0x8] sm:$0xff] (!%p897_p4)  ;;  %v751_v42 = vld [vmem:[#allocation4 + $0x10] sm:$0xff] (!%p897_p4)  ;;  %vm765_vm4 = vcmask (!%p897_p4), 7168   ;;  %vm803_vm2 = vcmask (!%p897_p4), 0  }
 0x244   : > { %748 = sbr.rel (%p897_p4) target bundleno = 624 (0x270), region = 66  ;;  %v752_v4 = vld [vmem:[#allocation4 + $0x18] sm:$0xff] (!%p897_p4)  ;;  %v766_v21 = vsel (!%p897_p4), %vm765_vm4, %v749_v9, 0.0  ;;  %v767_v20 = vsel (!%p897_p4), %vm765_vm4, %v750_v22, 0.0  ;;  %v769_v15 = vsel (!%p897_p4), %vm765_vm4, %v751_v42, 0.0  ;;  %v753_v49 = vld [vmem:[#allocation4 + $0x20] sm:$0xff] (!%p897_p4) }
 0x245   : > { %v768_v50 = vadd.f32 (!%p897_p4), %v767_v20, %v766_v21  ;;  %v771_v52 = vsel (!%p897_p4), %vm765_vm4, %v752_v4, 0.0  ;;  %v754_v0 = vld [vmem:[#allocation4 + $0x28] sm:$0xff] (!%p897_p4)  ;;  %v773_v55 = vsel (!%p897_p4), %vm765_vm4, %v753_v49, 0.0  ;;  %v755_v56 = vld [vmem:[#allocation4 + $0x30] sm:$0xff] (!%p897_p4)  ;;  %v756_v59 = vld [vmem:[#allocation4 + $0x38] sm:$0xff] (!%p897_p4) }
 0x246   : > { %v775_v58 = vsel (!%p897_p4), %vm765_vm4, %v754_v0, 0.0  ;;  %v777_v62 = vsel (!%p897_p4), %vm765_vm4, %v755_v56, 0.0  ;;  %v757_v2 = vld [vmem:[#allocation4 + $0x40] sm:$0xff] (!%p897_p4)  ;;  %v779_v54 = vsel (!%p897_p4), %vm765_vm4, %v756_v59, 0.0  ;;  %v758_v3 = vld [vmem:[#allocation4 + $0x48] sm:$0xff] (!%p897_p4)  ;;  %v759_v7 = vld [vmem:[#allocation4 + $0x50] sm:$0xff] (!%p897_p4) }
 0x247   : > { %v770_v53 = vadd.f32 (!%p897_p4), %v769_v15, %v768_v50  ;;  %v781_v5 = vsel (!%p897_p4), %vm765_vm4, %v757_v2, 0.0  ;;  %v783_v10 = vsel (!%p897_p4), %vm765_vm4, %v758_v3, 0.0  ;;  %v760_v11 = vld [vmem:[#allocation4 + $0x58] sm:$0xff] (!%p897_p4)  ;;  %v785_v14 = vsel (!%p897_p4), %vm765_vm4, %v759_v7, 0.0  ;;  %v761_v16 = vld [vmem:[#allocation4 + $0x60] sm:$0xff] (!%p897_p4)  ;;  %v762_v23 = vld [vmem:[#allocation4 + $0x68] sm:$0xff] (!%p897_p4) }
 0x248   : > { %v787_v19 = vsel (!%p897_p4), %vm765_vm4, %v760_v11, 0.0  ;;  %v789_v25 = vsel (!%p897_p4), %vm765_vm4, %v761_v16, 0.0  ;;  %v763_v26 = vld [vmem:[#allocation4 + $0x70] sm:$0xff] (!%p897_p4)  ;;  %v791_v30 = vsel (!%p897_p4), %vm765_vm4, %v762_v23, 0.0  ;;  %v764_v29 = vld [vmem:[#allocation4 + $0x78] sm:$0xff] (!%p897_p4) }
 0x249   : > { %v772_v57 = vadd.f32 (!%p897_p4), %v771_v52, %v770_v53  ;;  %v793_v32 = vsel (!%p897_p4), %vm765_vm4, %v763_v26, 0.0  ;;  %v795_v34 = vsel (!%p897_p4), %vm765_vm4, %v764_v29, 0.0 }
 0x24b   : > { %v774_v60 = vadd.f32 %v773_v55, %v772_v57 }
 0x24d   : > { %v776_v61 = vadd.f32 %v775_v58, %v774_v60 }
 0x24f   : > { %v778_v51 = vadd.f32 %v777_v62, %v776_v61 }
 0x251   : > { %v780_v8 = vadd.f32 %v779_v54, %v778_v51 }
 0x253   : > { %v782_v13 = vadd.f32 %v781_v5, %v780_v8 }
 0x255   : > { %v784_v17 = vadd.f32 %v783_v10, %v782_v13 }
 0x257   : > { %v786_v24 = vadd.f32 %v785_v14, %v784_v17 }
 0x259   : > { %v788_v28 = vadd.f32 %v787_v19, %v786_v24 }
 0x25b   : > { %v790_v31 = vadd.f32 %v789_v25, %v788_v28 }
 0x25d   : > { %v792_v33 = vadd.f32 %v791_v30, %v790_v31 }
 0x25f   : > { %v794_v35 = vadd.f32 %v793_v32, %v792_v33 }
 0x261   : > { %v796_v36 = vadd.f32 %v795_v34, %v794_v35 }
 0x263   : > { %v797_v39 = vrot.slane %v796_v36, 4 }
 0x265   : > { %v798_v6 = vadd.f32 %v797_v39, %v796_v36 }
 0x267   : > { %v799_v37 = vrot.slane %v798_v6, 2 }
 0x269   : > { %v800_v27 = vadd.f32 %v799_v37, %v798_v6 }
 0x26b   : > { %v801_v38 = vrot.slane %v800_v27, 1 }
 0x26d   : > { %v802_v18 = vadd.f32 %v801_v38, %v800_v27 }
 0x26f   : > { %804 = vst.msk [vmem:[#allocation8] sm:$0x1] %vm803_vm2, %v802_v18 }
 0x270 PF: > { %p1590_p5 = scmp.eq.s32.totalorder %s871_s0, 1  ;;  %s1219_s19 = smov [#allocation8]  }
 0x271   : > { %s814_s25 = sshll.u32 %s1219_s19, 4  ;;  %s815_s25 = int_to_ptr.vmem [resolvable:$true] %s814_s25 }
 0x272   : > { %s1138_s26 = scalar_lea.vmem %s815_s25, 16  ;;  %s1144_s27 = scalar_lea.vmem %s815_s25, 32 }
 0x273   : > { %p1139_p6 = scmp.ne.s32.totalorder %s815_s25, %s1138_s26  ;;  %p1145_p9 = scmp.lt.s32.totalorder %s815_s25, %s815_s25 }
 0x274   : > { %p1146_p10 = scmp.lt.s32.totalorder %s1144_s27, %s1138_s26 }
 0x275   : > { %p1140_p7 = pnand %p1139_p6, %p1590_p5 }
 0x276   : > { %p1147_p11 = por %p1146_p10, %p1145_p9 }
 0x277   : > { %p1141_p8 = pneg %p1140_p7 }
 0x279   : > { %p1148_p12 = pnand %p1147_p11, %p1141_p8 }
 0x27b   : > { %1151 = shalt.err (!%p1148_p12)
}
 0x27c   : > { %s1152_s8 = scalar_lea.hbm %s1630_s5, 16 }
 0x27d   : > { %p1153_p13 = scmp.ne.s32.totalorder %s1630_s5, %s1152_s8  ;;  %p1158_p2 = scmp.lt.u32.totalorder %s1152_s8, %s1630_s5 }
 0x27f   : > { %p1154_p0 = pnand %p1153_p13, %p1590_p5 }
 0x281   : > { %p1155_p1 = pneg %p1154_p0 }
 0x283   : > { %p1160_p3 = pnand %p1158_p2, %p1155_p1 }
 0x285   : > { %1163 = shalt.err (!%p1160_p3)
}
 0x286   : > { %968 = dma.vmem_to_hbm [thread:$0]  (%p1590_p5), %s815_s25, 16, %s1630_s5, [#allocation9]  }
 0x287   : > { %1191 = dma.done.wait (%p1590_p5), [#allocation9], 16  }
 0x288   : > { %1193 = vsyncadd (%p1590_p5), [#allocation9], 4294967280 }
 0x289 PF: > { %s20_s30 = sadd.s32 1, %s1204_s30   ;;  %s1632_s28 = smov %s1200_s29 }
 0x28a   : > { %p17_p4 = scmp.ge.s32.totalorder %s20_s30, 4   ;;  %s1633_s29 = smov %s1635_s6 }
 0x28c   :  { %19 = sbr.rel (!%p17_p4) target bundleno = 14 (0xe), region = 115 }
 0x293   :  { %827 = vsyncpa [#allocation9], 1 }
 0x294   :  { %829 = vsyncpa [#allocation9 + $0x1], 1 }
 0x295   :  { %830 = vsyncmov [#allocation5] }
 0x298   :  { %s831_s15 = vpop.sfrf %830 }
 0x299   :  { %p902_p6 = scmp.ne.s32.totalorder %s831_s15, 0 }
 0x29b   :  { %835 = shalt.err (%p902_p6)  }

</bundles_post_ra>
